<compile_context>
chip_gen: v7x
topology: tpu7x:2x2x1
jax: 0.10.0
libtpu: 0.0.40
codegen_flags: <defaults>
</compile_context>

<pallas_src>
import functools
import math

import jax
import jax.numpy as jnp
from jax import lax
from jax.experimental import pallas as pl
from jax.experimental.pallas import tpu as pltpu


# ----------------------------------------------------------------------------
# Pallas kernel
# ----------------------------------------------------------------------------
def attention_layer_kernel(add_pe, with_classifier, *refs):
    """One self-attention layer (+ optional fused PE add / classifier).

    Inputs  : x (Bb,S,D) f32, mask (Bb,1,S) f32 [1.0 = masked key],
              [pe (S,D) f32], wq/wk/wv/wo (D,D) bf16, bq/bk/bv/bo (1,D) f32,
              [wc (D,C) bf16, bc (1,C) f32]
    Outputs : out (Bb,S,D) f32, attn (Bb,S,S) f32, [logits (Bb,C) f32]
    """
    refs = list(refs)
    idx = 0
    x_ref, mask_ref = refs[idx], refs[idx + 1]
    idx += 2
    pe_ref = None
    if add_pe:
        pe_ref = refs[idx]
        idx += 1
    wq_ref, wk_ref, wv_ref, wo_ref = refs[idx:idx + 4]
    idx += 4
    bq_ref, bk_ref, bv_ref, bo_ref = refs[idx:idx + 4]
    idx += 4
    wc_ref = bc_ref = None
    if with_classifier:
        wc_ref, bc_ref = refs[idx:idx + 2]
        idx += 2
    out_ref, attn_ref = refs[idx], refs[idx + 1]
    idx += 2
    logits_ref = refs[idx] if with_classifier else None

    Bb, S, D = x_ref.shape

    x = x_ref[...]                                     # (Bb, S, D) f32
    if add_pe:
        x = x + pe_ref[...]                            # broadcast (S,D)->(Bb,S,D)

    # Fold batch into M so the MXU sees (Bb*S, D) x (D, D).
    x2 = x.reshape(Bb * S, D)                          # f32
    xb = x2.astype(jnp.bfloat16)

    scale = jnp.float32(1.0 / math.sqrt(D))
    # Scale folded into q (post-bias), matching PyTorch's q * (1/sqrt(d)).
    q = (jnp.dot(xb, wq_ref[...], preferred_element_type=jnp.float32)
         + bq_ref[...]) * scale
    k = jnp.dot(xb, wk_ref[...], preferred_element_type=jnp.float32) + bk_ref[...]
    v = jnp.dot(xb, wv_ref[...], preferred_element_type=jnp.float32) + bv_ref[...]

    q3 = q.reshape(Bb, S, D).astype(jnp.bfloat16)
    k3 = k.reshape(Bb, S, D).astype(jnp.bfloat16)
    v3 = v.reshape(Bb, S, D).astype(jnp.bfloat16)

    # Batched q @ k^T without materializing a transpose (contract last dims).
    scores = lax.dot_general(q3, k3, (((2,), (2,)), ((0,), (0,))),
                             preferred_element_type=jnp.float32)   # (Bb,S,S) f32

    # key_padding_mask: mask == 1 -> key excluded from attention (f32 math).
    scores = scores + mask_ref[...] * jnp.float32(-1e30)

    # Numerically stable softmax over keys, kept in f32 on the VPU/EUP.
    scores = scores - jnp.max(scores, axis=-1, keepdims=True)
    p = jnp.exp(scores)
    denom = jnp.sum(p, axis=-1, keepdims=True)
    attn = p * pl.reciprocal(denom, approx=True)                   # (Bb,S,S) f32

    ctx = lax.dot_general(attn.astype(jnp.bfloat16), v3,
                          (((2,), (1,)), ((0,), (0,))),
                          preferred_element_type=jnp.float32)      # (Bb,S,D) f32
    ctx2 = ctx.reshape(Bb * S, D).astype(jnp.bfloat16)
    proj = (jnp.dot(ctx2, wo_ref[...], preferred_element_type=jnp.float32)
            + bo_ref[...])

    # Residual + (x - mean) / sqrt(var); torch.var default is unbiased (ddof=1).
    y = proj + x2
    m = jnp.mean(y, axis=-1, keepdims=True)
    cen = y - m
    var = jnp.sum(cen * cen, axis=-1, keepdims=True) * jnp.float32(1.0 / (D - 1))
    # No epsilon, to match `x / torch.sqrt(var)` in the reference module.
    ynorm = cen * lax.rsqrt(var)                                   # (Bb*S, D) f32
    y3 = ynorm.reshape(Bb, S, D)

    out_ref[...] = y3
    attn_ref[...] = attn

    if with_classifier:
        # Fused classifier epilogue on the CLS row: (Bb, D) @ (D, C) + (1, C).
        cls = y3[:, 0, :].astype(jnp.bfloat16)
        logits_ref[...] = (jnp.dot(cls, wc_ref[...],
                                   preferred_element_type=jnp.float32)
                           + bc_ref[...])


# ----------------------------------------------------------------------------
# Wrappers
# ----------------------------------------------------------------------------
def _pick_block_b(B, S, target_m=512):
    """Largest batch block (dividing B) with Bb*S near target_m."""
    bb = max(1, min(B, max(1, target_m // max(S, 1))))
    while B % bb != 0:
        bb -= 1
    return bb


def attention_layer_pallas(x, mask_f, layer, *, pe=None, classifier=None,
                           block_b=None):
    """x: (B, S, D) f32, mask_f: (B, 1, S) f32 (1.0 = padded key)."""
    B, S, D = x.shape
    add_pe = pe is not None
    with_cls = classifier is not None
    Bb = block_b if block_b is not None else _pick_block_b(B, S)
    grid = (B // Bb,)

    def full_spec(arr):
        nd = arr.ndim
        return pl.BlockSpec(arr.shape, lambda *_: (0,) * nd)

    in_specs = [pl.BlockSpec((Bb, S, D), lambda b: (b, 0, 0)),   # x
                pl.BlockSpec((Bb, 1, S), lambda b: (b, 0, 0))]   # mask
    args = [x, mask_f]
    if add_pe:
        in_specs.append(full_spec(pe))
        args.append(pe)
    for name in ("wq", "wk", "wv", "wo", "bq", "bk", "bv", "bo"):
        in_specs.append(full_spec(layer[name]))
        args.append(layer[name])

    out_shape = [jax.ShapeDtypeStruct((B, S, D), jnp.float32),
                 jax.ShapeDtypeStruct((B, S, S), jnp.float32)]
    out_specs = [pl.BlockSpec((Bb, S, D), lambda b: (b, 0, 0)),
                 pl.BlockSpec((Bb, S, S), lambda b: (b, 0, 0))]
    if with_cls:
        wc, bc = classifier
        C = wc.shape[1]
        in_specs += [full_spec(wc), full_spec(bc)]
        args += [wc, bc]
        out_shape.append(jax.ShapeDtypeStruct((B, C), jnp.float32))
        out_specs.append(pl.BlockSpec((Bb, C), lambda b: (b, 0)))

    kernel = functools.partial(attention_layer_kernel, add_pe, with_cls)
    return pl.pallas_call(
        kernel,
        out_shape=tuple(out_shape),
        grid=grid,
        in_specs=in_specs,
        out_specs=tuple(out_specs),
        compiler_params=pltpu.CompilerParams(
            dimension_semantics=("parallel",)),
    )(*args)


def sinusoidal_pe(max_len, d_model):
    pos = jnp.arange(max_len, dtype=jnp.float32)[:, None]
    div = jnp.exp(jnp.arange(0, d_model, 2, dtype=jnp.float32)
                  * (-math.log(10000.0) / d_model))
    pe = jnp.zeros((max_len, d_model), jnp.float32)
    pe = pe.at[:, 0::2].set(jnp.sin(pos * div))
    pe = pe.at[:, 1::2].set(jnp.cos(pos * div))
    return pe


def init_params(key, vocab_size, d_embedding, n_class, num_layers, padding_idx):
    keys = jax.random.split(key, 3 + 8 * num_layers)
    ki = iter(keys)
    emb = 0.02 * jax.random.normal(next(ki), (vocab_size, d_embedding), jnp.float32)
    emb = emb.at[padding_idx].set(0.0)             # nn.Embedding padding_idx row = 0
    layers = []
    for _ in range(num_layers):
        layer = {}
        for name in ("wq", "wk", "wv", "wo"):      # bf16 MXU operands, f32 accum
            layer[name] = (0.1 * jax.random.normal(
                next(ki), (d_embedding, d_embedding),
                jnp.float32)).astype(jnp.bfloat16)
        for name in ("bq", "bk", "bv", "bo"):
            layer[name] = 0.01 * jax.random.normal(
                next(ki), (1, d_embedding), jnp.float32)
        layers.append(layer)
    wc = (0.1 * jax.random.normal(
        next(ki), (d_embedding, n_class), jnp.float32)).astype(jnp.bfloat16)
    bc = 0.01 * jax.random.normal(next(ki), (1, n_class), jnp.float32)
    return {"embedding": emb, "layers": layers, "wc": wc, "bc": bc}


def pure_attention_forward(ids, mask, params, pe_table):
    """ids, mask: (B, S) int32. mask nonzero = padding token (masked key)."""
    B, S = ids.shape
    emb_table = params["embedding"]
    D = emb_table.shape[1]

    # TODO(synk): embedding gather and PE table stay as XLA glue (no clean
    # Pallas gather win at these shapes); PE table is built once and passed in.
    x = jnp.take(emb_table, ids, axis=0)               # (B, S, D)
    pe_s = pe_table[:S]                                 # (S, D), added in-kernel
    mask_f = (mask != 0).astype(jnp.float32)[:, None, :]  # (B, 1, S)

    layers = params["layers"]
    n_layers = len(layers)
    hidden_states = []
    attention_weights = []
    logits = None
    for i, layer in enumerate(layers):
        pe = pe_s if i == 0 else None
        cls_wb = (params["wc"], params["bc"]) if i == n_layers - 1 else None
        outs = attention_layer_pallas(x, mask_f, layer, pe=pe, classifier=cls_wb)
        if cls_wb is not None:
            x, attn, logits = outs
        else:
            x, attn = outs
        hidden_states.append(x)
        attention_weights.append(attn)

    cls_tokens = x[:, 0, :]
    return {"last_hidden_states": x,
            "hidden_states": hidden_states,
            "attn_weights": attention_weights,
            "cls_tokens": cls_tokens,
            "logits": logits}


# ----------------------------------------------------------------------------
# Main
# ----------------------------------------------------------------------------
if __name__ == "__main__":
    B, S, D = 2, 8, 32
    vocab_size, padding_idx, n_class, num_layers = 16, 0, 3, 1

    key = jax.random.PRNGKey(0)
    k_params, k_ids = jax.random.split(key)

    params = init_params(k_params, vocab_size, D, n_class, num_layers, padding_idx)
    pe_table = sinusoidal_pe(10000, D)                 # built once, outside forward
    ids = jax.random.randint(k_ids, (B, S), 1, vocab_size, dtype=jnp.int32)
    mask = jnp.zeros_like(ids)                         # matches torch.zeros_like(x)

    fwd = jax.jit(pure_attention_forward)
    out = fwd(ids, mask, params, pe_table)
    jax.block_until_ready(out["logits"])
    jax.block_until_ready(out["last_hidden_states"])

    assert out["logits"].shape == (B, n_class)
    assert out["last_hidden_states"].shape == (B, S, D)
    assert out["attn_weights"][0].shape == (B, S, S)
    assert not bool(jnp.any(jnp.isnan(out["logits"])))
    print("KERNEL_OK")
</pallas_src>

<mosaic_0001>
module attributes {stable_mosaic.version = 11 : i64} {
  func.func @attention_layer_kernel(%arg0: i32, %arg1: memref<2x8x32xf32, #tpu.memory_space<vmem>>, %arg2: memref<2x1x8xf32, #tpu.memory_space<vmem>>, %arg3: memref<8x32xf32, #tpu.memory_space<vmem>>, %arg4: memref<32x32xbf16, #tpu.memory_space<vmem>>, %arg5: memref<32x32xbf16, #tpu.memory_space<vmem>>, %arg6: memref<32x32xbf16, #tpu.memory_space<vmem>>, %arg7: memref<32x32xbf16, #tpu.memory_space<vmem>>, %arg8: memref<1x32xf32, #tpu.memory_space<vmem>>, %arg9: memref<1x32xf32, #tpu.memory_space<vmem>>, %arg10: memref<1x32xf32, #tpu.memory_space<vmem>>, %arg11: memref<1x32xf32, #tpu.memory_space<vmem>>, %arg12: memref<32x3xbf16, #tpu.memory_space<vmem>>, %arg13: memref<1x3xf32, #tpu.memory_space<vmem>>, %arg14: memref<2x8x32xf32, #tpu.memory_space<vmem>>, %arg15: memref<2x8x8xf32, #tpu.memory_space<vmem>>, %arg16: memref<2x3xf32, #tpu.memory_space<vmem>>) attributes {dimension_semantics = [#tpu.dimension_semantics<parallel>], iteration_bounds = array<i64: 1>, scalar_prefetch = 0 : i64, scratch_operands = 0 : i64, tpu.core_type = #tpu.core_type<tc>, window_params = [{transform_indices = @transform_0, window_bounds = array<i64: 2, 8, 32>}, {transform_indices = @transform_1, window_bounds = array<i64: 2, 1, 8>}, {pipeline_mode = #tpu.pipeline_mode<synchronous>, transform_indices = @transform_2, window_bounds = array<i64: 8, 32>}, {pipeline_mode = #tpu.pipeline_mode<synchronous>, transform_indices = @transform_3, window_bounds = array<i64: 32, 32>}, {pipeline_mode = #tpu.pipeline_mode<synchronous>, transform_indices = @transform_4, window_bounds = array<i64: 32, 32>}, {pipeline_mode = #tpu.pipeline_mode<synchronous>, transform_indices = @transform_5, window_bounds = array<i64: 32, 32>}, {pipeline_mode = #tpu.pipeline_mode<synchronous>, transform_indices = @transform_6, window_bounds = array<i64: 32, 32>}, {pipeline_mode = #tpu.pipeline_mode<synchronous>, transform_indices = @transform_7, window_bounds = array<i64: 1, 32>}, {pipeline_mode = #tpu.pipeline_mode<synchronous>, transform_indices = @transform_8, window_bounds = array<i64: 1, 32>}, {pipeline_mode = #tpu.pipeline_mode<synchronous>, transform_indices = @transform_9, window_bounds = array<i64: 1, 32>}, {pipeline_mode = #tpu.pipeline_mode<synchronous>, transform_indices = @transform_10, window_bounds = array<i64: 1, 32>}, {pipeline_mode = #tpu.pipeline_mode<synchronous>, transform_indices = @transform_11, window_bounds = array<i64: 32, 3>}, {pipeline_mode = #tpu.pipeline_mode<synchronous>, transform_indices = @transform_12, window_bounds = array<i64: 1, 3>}, {transform_indices = @transform_13, window_bounds = array<i64: 2, 8, 32>}, {transform_indices = @transform_14, window_bounds = array<i64: 2, 8, 8>}, {transform_indices = @transform_15, window_bounds = array<i64: 2, 3>}]} {
    %c0 = arith.constant 0 : index
    %c0_0 = arith.constant 0 : index
    %c0_1 = arith.constant 0 : index
    %0 = vector.load %arg1[%c0, %c0_0, %c0_1] : memref<2x8x32xf32, #tpu.memory_space<vmem>>, vector<2x8x32xf32>
    %c0_2 = arith.constant 0 : index
    %c0_3 = arith.constant 0 : index
    %1 = vector.load %arg3[%c0_2, %c0_3] : memref<8x32xf32, #tpu.memory_space<vmem>>, vector<8x32xf32>
    %2 = vector.shape_cast %1 : vector<8x32xf32> to vector<1x8x32xf32>
    %3 = vector.broadcast %2 : vector<1x8x32xf32> to vector<2x8x32xf32>
    %4 = arith.addf %0, %3 : vector<2x8x32xf32>
    %5 = vector.shape_cast %4 : vector<2x8x32xf32> to vector<16x32xf32>
    %6 = arith.truncf %5 : vector<16x32xf32> to vector<16x32xbf16>
    %c0_4 = arith.constant 0 : index
    %c0_5 = arith.constant 0 : index
    %7 = vector.load %arg4[%c0_4, %c0_5] : memref<32x32xbf16, #tpu.memory_space<vmem>>, vector<32x32xbf16>
    %cst = arith.constant dense<0.000000e+00> : vector<16x32xf32>
    %8 = tpu.matmul %6, %7, %cst {dimension_numbers = #tpu.dot_dimension_numbers<[1], [0], [0], [1], [0, 0, 1, 1], [], []>} : vector<16x32xbf16>, vector<32x32xbf16>, vector<16x32xf32> -> vector<16x32xf32>
    %c0_6 = arith.constant 0 : index
    %c0_7 = arith.constant 0 : index
    %9 = vector.load %arg8[%c0_6, %c0_7] : memref<1x32xf32, #tpu.memory_space<vmem>>, vector<1x32xf32>
    %10 = vector.broadcast %9 : vector<1x32xf32> to vector<16x32xf32>
    %11 = arith.addf %8, %10 : vector<16x32xf32>
    %cst_8 = arith.constant 0.176776692 : f32
    %12 = vector.broadcast %cst_8 : f32 to vector<16x32xf32>
    %13 = arith.mulf %11, %12 : vector<16x32xf32>
    %c0_9 = arith.constant 0 : index
    %c0_10 = arith.constant 0 : index
    %14 = vector.load %arg5[%c0_9, %c0_10] : memref<32x32xbf16, #tpu.memory_space<vmem>>, vector<32x32xbf16>
    %cst_11 = arith.constant dense<0.000000e+00> : vector<16x32xf32>
    %15 = tpu.matmul %6, %14, %cst_11 {dimension_numbers = #tpu.dot_dimension_numbers<[1], [0], [0], [1], [0, 0, 1, 1], [], []>} : vector<16x32xbf16>, vector<32x32xbf16>, vector<16x32xf32> -> vector<16x32xf32>
    %c0_12 = arith.constant 0 : index
    %c0_13 = arith.constant 0 : index
    %16 = vector.load %arg9[%c0_12, %c0_13] : memref<1x32xf32, #tpu.memory_space<vmem>>, vector<1x32xf32>
    %17 = vector.broadcast %16 : vector<1x32xf32> to vector<16x32xf32>
    %18 = arith.addf %15, %17 : vector<16x32xf32>
    %c0_14 = arith.constant 0 : index
    %c0_15 = arith.constant 0 : index
    %19 = vector.load %arg6[%c0_14, %c0_15] : memref<32x32xbf16, #tpu.memory_space<vmem>>, vector<32x32xbf16>
    %cst_16 = arith.constant dense<0.000000e+00> : vector<16x32xf32>
    %20 = tpu.matmul %6, %19, %cst_16 {dimension_numbers = #tpu.dot_dimension_numbers<[1], [0], [0], [1], [0, 0, 1, 1], [], []>} : vector<16x32xbf16>, vector<32x32xbf16>, vector<16x32xf32> -> vector<16x32xf32>
    %c0_17 = arith.constant 0 : index
    %c0_18 = arith.constant 0 : index
    %21 = vector.load %arg10[%c0_17, %c0_18] : memref<1x32xf32, #tpu.memory_space<vmem>>, vector<1x32xf32>
    %22 = vector.broadcast %21 : vector<1x32xf32> to vector<16x32xf32>
    %23 = arith.addf %20, %22 : vector<16x32xf32>
    %24 = vector.shape_cast %13 : vector<16x32xf32> to vector<2x8x32xf32>
    %25 = arith.truncf %24 : vector<2x8x32xf32> to vector<2x8x32xbf16>
    %26 = vector.shape_cast %18 : vector<16x32xf32> to vector<2x8x32xf32>
    %27 = arith.truncf %26 : vector<2x8x32xf32> to vector<2x8x32xbf16>
    %28 = vector.shape_cast %23 : vector<16x32xf32> to vector<2x8x32xf32>
    %29 = arith.truncf %28 : vector<2x8x32xf32> to vector<2x8x32xbf16>
    %cst_19 = arith.constant dense<0.000000e+00> : vector<2x8x8xf32>
    %30 = tpu.matmul %25, %27, %cst_19 {dimension_numbers = #tpu.dot_dimension_numbers<[2], [2], [1], [1], [0, 0, 0, 1, 1, 1], [0], [0]>} : vector<2x8x32xbf16>, vector<2x8x32xbf16>, vector<2x8x8xf32> -> vector<2x8x8xf32>
    %c0_20 = arith.constant 0 : index
    %c0_21 = arith.constant 0 : index
    %c0_22 = arith.constant 0 : index
    %31 = vector.load %arg2[%c0_20, %c0_21, %c0_22] : memref<2x1x8xf32, #tpu.memory_space<vmem>>, vector<2x1x8xf32>
    %cst_23 = arith.constant -1.000000e+30 : f32
    %32 = vector.broadcast %cst_23 : f32 to vector<2x1x8xf32>
    %33 = arith.mulf %31, %32 : vector<2x1x8xf32>
    %34 = vector.broadcast %33 : vector<2x1x8xf32> to vector<2x8x8xf32>
    %35 = arith.addf %30, %34 : vector<2x8x8xf32>
    %cst_24 = arith.constant dense<0xFF800000> : vector<2x8xf32>
    %36 = vector.multi_reduction <maximumf>, %35, %cst_24 [2] : vector<2x8x8xf32> to vector<2x8xf32>
    %37 = vector.shape_cast %36 : vector<2x8xf32> to vector<2x8x1xf32>
    %38 = vector.broadcast %37 : vector<2x8x1xf32> to vector<2x8x8xf32>
    %39 = arith.subf %35, %38 : vector<2x8x8xf32>
    %40 = math.exp %39 : vector<2x8x8xf32>
    %cst_25 = arith.constant dense<0.000000e+00> : vector<2x8xf32>
    %41 = vector.multi_reduction <add>, %40, %cst_25 [2] : vector<2x8x8xf32> to vector<2x8xf32>
    %42 = vector.shape_cast %41 : vector<2x8xf32> to vector<2x8x1xf32>
    %43 = tpu.reciprocal %42 {approx = true} : vector<2x8x1xf32> -> vector<2x8x1xf32>
    %44 = vector.broadcast %43 : vector<2x8x1xf32> to vector<2x8x8xf32>
    %45 = arith.mulf %40, %44 : vector<2x8x8xf32>
    %46 = arith.truncf %45 : vector<2x8x8xf32> to vector<2x8x8xbf16>
    %cst_26 = arith.constant dense<0.000000e+00> : vector<2x8x32xf32>
    %47 = tpu.matmul %46, %29, %cst_26 {dimension_numbers = #tpu.dot_dimension_numbers<[2], [1], [1], [2], [0, 0, 0, 1, 1, 2], [0], [0]>} : vector<2x8x8xbf16>, vector<2x8x32xbf16>, vector<2x8x32xf32> -> vector<2x8x32xf32>
    %48 = vector.shape_cast %47 : vector<2x8x32xf32> to vector<16x32xf32>
    %49 = arith.truncf %48 : vector<16x32xf32> to vector<16x32xbf16>
    %c0_27 = arith.constant 0 : index
    %c0_28 = arith.constant 0 : index
    %50 = vector.load %arg7[%c0_27, %c0_28] : memref<32x32xbf16, #tpu.memory_space<vmem>>, vector<32x32xbf16>
    %cst_29 = arith.constant dense<0.000000e+00> : vector<16x32xf32>
    %51 = tpu.matmul %49, %50, %cst_29 {dimension_numbers = #tpu.dot_dimension_numbers<[1], [0], [0], [1], [0, 0, 1, 1], [], []>} : vector<16x32xbf16>, vector<32x32xbf16>, vector<16x32xf32> -> vector<16x32xf32>
    %c0_30 = arith.constant 0 : index
    %c0_31 = arith.constant 0 : index
    %52 = vector.load %arg11[%c0_30, %c0_31] : memref<1x32xf32, #tpu.memory_space<vmem>>, vector<1x32xf32>
    %53 = vector.broadcast %52 : vector<1x32xf32> to vector<16x32xf32>
    %54 = arith.addf %51, %53 : vector<16x32xf32>
    %55 = arith.addf %54, %5 : vector<16x32xf32>
    %cst_32 = arith.constant dense<0.000000e+00> : vector<16xf32>
    %56 = vector.multi_reduction <add>, %55, %cst_32 [1] : vector<16x32xf32> to vector<16xf32>
    %57 = vector.shape_cast %56 : vector<16xf32> to vector<16x1xf32>
    %cst_33 = arith.constant 3.200000e+01 : f32
    %58 = vector.broadcast %cst_33 : f32 to vector<16x1xf32>
    %59 = arith.divf %57, %58 : vector<16x1xf32>
    %60 = vector.broadcast %59 : vector<16x1xf32> to vector<16x32xf32>
    %61 = arith.subf %55, %60 : vector<16x32xf32>
    %62 = arith.mulf %61, %61 : vector<16x32xf32>
    %cst_34 = arith.constant dense<0.000000e+00> : vector<16xf32>
    %63 = vector.multi_reduction <add>, %62, %cst_34 [1] : vector<16x32xf32> to vector<16xf32>
    %64 = vector.shape_cast %63 : vector<16xf32> to vector<16x1xf32>
    %cst_35 = arith.constant 0.0322580636 : f32
    %65 = vector.broadcast %cst_35 : f32 to vector<16x1xf32>
    %66 = arith.mulf %64, %65 : vector<16x1xf32>
    %67 = math.rsqrt %66 : vector<16x1xf32>
    %68 = vector.broadcast %67 : vector<16x1xf32> to vector<16x32xf32>
    %69 = arith.mulf %61, %68 : vector<16x32xf32>
    %70 = vector.shape_cast %69 : vector<16x32xf32> to vector<2x8x32xf32>
    %c0_36 = arith.constant 0 : index
    %c0_37 = arith.constant 0 : index
    %c0_38 = arith.constant 0 : index
    %71 = vector.load %arg14[%c0_36, %c0_37, %c0_38] : memref<2x8x32xf32, #tpu.memory_space<vmem>>, vector<2x8x32xf32>
    tpu.vector_store %arg14[%c0_36, %c0_37, %c0_38], %70 {strides = array<i32>} : memref<2x8x32xf32, #tpu.memory_space<vmem>>, vector<2x8x32xf32>,
    %c0_39 = arith.constant 0 : index
    %c0_40 = arith.constant 0 : index
    %c0_41 = arith.constant 0 : index
    %72 = vector.load %arg15[%c0_39, %c0_40, %c0_41] : memref<2x8x8xf32, #tpu.memory_space<vmem>>, vector<2x8x8xf32>
    tpu.vector_store %arg15[%c0_39, %c0_40, %c0_41], %45 {strides = array<i32>} : memref<2x8x8xf32, #tpu.memory_space<vmem>>, vector<2x8x8xf32>,
    %73 = vector.extract_strided_slice %70 {offsets = [0, 0, 0], sizes = [2, 1, 32], strides = [1, 1, 1]} : vector<2x8x32xf32> to vector<2x1x32xf32>
    %74 = vector.shape_cast %73 : vector<2x1x32xf32> to vector<2x32xf32>
    %75 = arith.truncf %74 : vector<2x32xf32> to vector<2x32xbf16>
    %c0_42 = arith.constant 0 : index
    %c0_43 = arith.constant 0 : index
    %76 = vector.load %arg12[%c0_42, %c0_43] : memref<32x3xbf16, #tpu.memory_space<vmem>>, vector<32x3xbf16>
    %cst_44 = arith.constant dense<0.000000e+00> : vector<2x3xf32>
    %77 = tpu.matmul %75, %76, %cst_44 {dimension_numbers = #tpu.dot_dimension_numbers<[1], [0], [0], [1], [0, 0, 1, 1], [], []>} : vector<2x32xbf16>, vector<32x3xbf16>, vector<2x3xf32> -> vector<2x3xf32>
    %c0_45 = arith.constant 0 : index
    %c0_46 = arith.constant 0 : index
    %78 = vector.load %arg13[%c0_45, %c0_46] : memref<1x3xf32, #tpu.memory_space<vmem>>, vector<1x3xf32>
    %79 = vector.broadcast %78 : vector<1x3xf32> to vector<2x3xf32>
    %80 = arith.addf %77, %79 : vector<2x3xf32>
    %c0_47 = arith.constant 0 : index
    %c0_48 = arith.constant 0 : index
    %81 = vector.load %arg16[%c0_47, %c0_48] : memref<2x3xf32, #tpu.memory_space<vmem>>, vector<2x3xf32>
    tpu.vector_store %arg16[%c0_47, %c0_48], %80 {strides = array<i32>} : memref<2x3xf32, #tpu.memory_space<vmem>>, vector<2x3xf32>,
    return
  }
  func.func @transform_0(%arg0: i32) -> (i32, i32, i32) {
    %c0_i32 = arith.constant 0 : i32
    %c0_i32_0 = arith.constant 0 : i32
    %c0_i32_1 = arith.constant 0 : i32
    return %arg0, %c0_i32, %c0_i32_0 : i32, i32, i32
  }
  func.func @transform_1(%arg0: i32) -> (i32, i32, i32) {
    %c0_i32 = arith.constant 0 : i32
    %c0_i32_0 = arith.constant 0 : i32
    %c0_i32_1 = arith.constant 0 : i32
    return %arg0, %c0_i32, %c0_i32_0 : i32, i32, i32
  }
  func.func @transform_2(%arg0: i32) -> (i32, i32) {
    %c0_i32 = arith.constant 0 : i32
    %c0_i32_0 = arith.constant 0 : i32
    %c0_i32_1 = arith.constant 0 : i32
    return %c0_i32, %c0_i32_0 : i32, i32
  }
  func.func @transform_3(%arg0: i32) -> (i32, i32) {
    %c0_i32 = arith.constant 0 : i32
    %c0_i32_0 = arith.constant 0 : i32
    %c0_i32_1 = arith.constant 0 : i32
    return %c0_i32, %c0_i32_0 : i32, i32
  }
  func.func @transform_4(%arg0: i32) -> (i32, i32) {
    %c0_i32 = arith.constant 0 : i32
    %c0_i32_0 = arith.constant 0 : i32
    %c0_i32_1 = arith.constant 0 : i32
    return %c0_i32, %c0_i32_0 : i32, i32
  }
  func.func @transform_5(%arg0: i32) -> (i32, i32) {
    %c0_i32 = arith.constant 0 : i32
    %c0_i32_0 = arith.constant 0 : i32
    %c0_i32_1 = arith.constant 0 : i32
    return %c0_i32, %c0_i32_0 : i32, i32
  }
  func.func @transform_6(%arg0: i32) -> (i32, i32) {
    %c0_i32 = arith.constant 0 : i32
    %c0_i32_0 = arith.constant 0 : i32
    %c0_i32_1 = arith.constant 0 : i32
    return %c0_i32, %c0_i32_0 : i32, i32
  }
  func.func @transform_7(%arg0: i32) -> (i32, i32) {
    %c0_i32 = arith.constant 0 : i32
    %c0_i32_0 = arith.constant 0 : i32
    %c0_i32_1 = arith.constant 0 : i32
    return %c0_i32, %c0_i32_0 : i32, i32
  }
  func.func @transform_8(%arg0: i32) -> (i32, i32) {
    %c0_i32 = arith.constant 0 : i32
    %c0_i32_0 = arith.constant 0 : i32
    %c0_i32_1 = arith.constant 0 : i32
    return %c0_i32, %c0_i32_0 : i32, i32
  }
  func.func @transform_9(%arg0: i32) -> (i32, i32) {
    %c0_i32 = arith.constant 0 : i32
    %c0_i32_0 = arith.constant 0 : i32
    %c0_i32_1 = arith.constant 0 : i32
    return %c0_i32, %c0_i32_0 : i32, i32
  }
  func.func @transform_10(%arg0: i32) -> (i32, i32) {
    %c0_i32 = arith.constant 0 : i32
    %c0_i32_0 = arith.constant 0 : i32
    %c0_i32_1 = arith.constant 0 : i32
    return %c0_i32, %c0_i32_0 : i32, i32
  }
  func.func @transform_11(%arg0: i32) -> (i32, i32) {
    %c0_i32 = arith.constant 0 : i32
    %c0_i32_0 = arith.constant 0 : i32
    %c0_i32_1 = arith.constant 0 : i32
    return %c0_i32, %c0_i32_0 : i32, i32
  }
  func.func @transform_12(%arg0: i32) -> (i32, i32) {
    %c0_i32 = arith.constant 0 : i32
    %c0_i32_0 = arith.constant 0 : i32
    %c0_i32_1 = arith.constant 0 : i32
    return %c0_i32, %c0_i32_0 : i32, i32
  }
  func.func @transform_13(%arg0: i32) -> (i32, i32, i32) {
    %c0_i32 = arith.constant 0 : i32
    %c0_i32_0 = arith.constant 0 : i32
    %c0_i32_1 = arith.constant 0 : i32
    return %arg0, %c0_i32, %c0_i32_0 : i32, i32, i32
  }
  func.func @transform_14(%arg0: i32) -> (i32, i32, i32) {
    %c0_i32 = arith.constant 0 : i32
    %c0_i32_0 = arith.constant 0 : i32
    %c0_i32_1 = arith.constant 0 : i32
    return %arg0, %c0_i32, %c0_i32_0 : i32, i32, i32
  }
  func.func @transform_15(%arg0: i32) -> (i32, i32) {
    %c0_i32 = arith.constant 0 : i32
    %c0_i32_0 = arith.constant 0 : i32
    return %arg0, %c0_i32 : i32, i32
  }
}

</mosaic_0001>

<bundles_post_ra>
// kernel: pure_attention_forward.1
= control target key start
LH: loop header
LB: loop body
LE: loop exit
PB: predicated region body
PF: predicated region fallthrough
CT: control target
= control target key end

     0   :  { %21 = vsyncpa [#allocation3], 0  ;;  %s1565_s0 = inlined_call_operand.vmem [shape: f32[2,8,32], index: 0, kind: input, shape index: {}]   ;;  %s1566_s1 = inlined_call_operand.vmem [shape: f32[2,1,8], index: 1, kind: input, shape index: {}]   ;;  %s1567_s2 = inlined_call_operand.vmem [shape: f32[8,32], index: 2, kind: input, shape index: {}]   ;;  %s1568_s3 = inlined_call_operand.hbm [shape: bf16[32,32], index: 3, kind: input, shape index: {}]   ;;  %s1569_s4 = inlined_call_operand.hbm [shape: bf16[32,32], index: 4, kind: input, shape index: {}]   ;;  %s1570_s5 = inlined_call_operand.hbm [shape: bf16[32,32], index: 5, kind: input, shape index: {}]   ;;  %s1571_s6 = inlined_call_operand.hbm [shape: bf16[32,32], index: 6, kind: input, shape index: {}]   ;;  %s1572_s7 = inlined_call_operand.hbm [shape: f32[1,32], index: 7, kind: input, shape index: {}]   ;;  %s1573_s8 = inlined_call_operand.hbm [shape: f32[1,32], index: 8, kind: input, shape index: {}]   ;;  %s1574_s9 = inlined_call_operand.hbm [shape: f32[1,32], index: 9, kind: input, shape index: {}]   ;;  %s1575_s10 = inlined_call_operand.hbm [shape: f32[1,32], index: 10, kind: input, shape index: {}]   ;;  %s1576_s11 = inlined_call_operand.vmem [shape: bf16[32,3], index: 11, kind: input, shape index: {}]   ;;  %s1577_s12 = inlined_call_operand.hbm [shape: f32[1,3], index: 12, kind: input, shape index: {}]   ;;  %s1578_s13 = inlined_call_operand.vmem [shape: f32[2,8,32], index: 13, kind: output, shape index: {0}]   ;;  %s1579_s14 = inlined_call_operand.hbm [shape: f32[2,8,8], index: 14, kind: output, shape index: {1}]   ;;  %s1580_s15 = inlined_call_operand.hbm [shape: f32[2,3], index: 15, kind: output, shape index: {2}]  }
   0x1   :  { %22 = vsyncpa [#allocation6], 0 }
   0x2   :  { %23 = vsyncpa [#allocation9], 0 }
   0x3   :  { %24 = vsyncpa [#allocation12], 0 }
   0x4   :  { %25 = vsyncpa [#allocation15], 0 }
   0x5   :  { %26 = vsyncpa [#allocation4], 0 }
   0x6   :  { %27 = vsyncpa [#allocation19], 0  ;;  %s1220_s18 = smov [#allocation5]   ;;  %s1221_s20 = smov [#allocation8]  }
   0x7   :  { %s51_s19 = sshll.u32 %s1220_s18, 4  ;;  %s75_s21 = sshll.u32 %s1221_s20, 4  ;;  %s52_s19 = int_to_ptr.vmem [resolvable:$true] %s51_s19  ;;  %s1317_s21 = int_to_ptr.vmem [resolvable:$true] %s75_s21 }
   0x8   :  { %s964_s24 = scalar_lea.hbm %s1569_s4, 256 }
   0x9   :  { %p965_p0 = scmp.ne.s32.totalorder %s1569_s4, %s964_s24  ;;  %p968_p1 = scmp.lt.u32.totalorder %s964_s24, %s1569_s4 }
   0xb   :  { %p970_p2 = pnand %p968_p1, %p965_p0 }
   0xd   :  { %973 = shalt.err (!%p970_p2)
}
   0xe   :  { %s974_s29 = scalar_lea.vmem %s52_s19, 256  ;;  %p979_p4 = scmp.lt.s32.totalorder %s52_s19, %s52_s19 }
   0xf   :  { %p975_p3 = scmp.ne.s32.totalorder %s52_s19, %s974_s29  ;;  %p980_p5 = scmp.lt.s32.totalorder %s974_s29, %s974_s29 }
  0x11   :  { %p981_p6 = por %p980_p5, %p979_p4 }
  0x13   :  { %p982_p7 = pnand %p981_p6, %p975_p3 }
  0x15   :  { %985 = shalt.err (!%p982_p7)
}
  0x16   :  { %s1222_s30 = smov 64   ;;  %s1223_s16 = smov 4  }
  0x17   :  { %57 = dma.hbm_to_vmem [thread:$0]  %s1569_s4, 256, %s52_s19, [#allocation6], %s1222_s30, %s1222_s30, %s1223_s16  }
  0x18   :  { %s986_s23 = scalar_lea.hbm %s1571_s6, 256 }
  0x19   :  { %p987_p8 = scmp.ne.s32.totalorder %s1571_s6, %s986_s23  ;;  %p990_p9 = scmp.lt.u32.totalorder %s986_s23, %s1571_s6 }
  0x1b   :  { %p992_p10 = pnand %p990_p9, %p987_p8 }
  0x1d   :  { %995 = shalt.err (!%p992_p10)
}
  0x1e   :  { %s996_s28 = scalar_lea.vmem %s1317_s21, 256  ;;  %p1001_p12 = scmp.lt.s32.totalorder %s1317_s21, %s1317_s21 }
  0x1f   :  { %p997_p11 = scmp.ne.s32.totalorder %s1317_s21, %s996_s28  ;;  %p1002_p13 = scmp.lt.s32.totalorder %s996_s28, %s996_s28 }
  0x21   :  { %p1003_p0 = por %p1002_p13, %p1001_p12 }
  0x23   :  { %p1004_p1 = pnand %p1003_p0, %p997_p11 }
  0x25   :  { %1007 = shalt.err (!%p1004_p1)
}
  0x26   :  { %81 = dma.hbm_to_vmem [thread:$0]  %s1571_s6, 256, %s1317_s21, [#allocation9], %s1222_s30, %s1222_s30, %s1223_s16  }
  0x27   :  { %s1224_s29 = smov [#allocation11]   ;;  %s1225_s18 = smov [#allocation14]  }
  0x28   :  { %s98_s17 = sshll.u32 %s1224_s29, 4  ;;  %s118_s20 = sshll.u32 %s1225_s18, 4  ;;  %s99_s17 = int_to_ptr.vmem [resolvable:$true] %s98_s17  ;;  %s119_s20 = int_to_ptr.vmem [resolvable:$true] %s118_s20 }
  0x29   :  { %s1008_s24 = scalar_lea.hbm %s1573_s8, 16 }
  0x2a   :  { %p1009_p2 = scmp.ne.s32.totalorder %s1573_s8, %s1008_s24  ;;  %p1012_p3 = scmp.lt.u32.totalorder %s1008_s24, %s1573_s8 }
  0x2c   :  { %p1014_p4 = pnand %p1012_p3, %p1009_p2 }
  0x2e   :  { %1017 = shalt.err (!%p1014_p4)
}
  0x2f   :  { %s1018_s6 = scalar_lea.vmem %s99_s17, 16  ;;  %s1022_s21 = scalar_lea.vmem %s99_s17, 32 }
  0x30   :  { %p1019_p5 = scmp.ne.s32.totalorder %s99_s17, %s1018_s6  ;;  %p1023_p6 = scmp.lt.s32.totalorder %s99_s17, %s99_s17 }
  0x31   :  { %p1024_p7 = scmp.lt.s32.totalorder %s1022_s21, %s1018_s6 }
  0x33   :  { %p1025_p8 = por %p1024_p7, %p1023_p6 }
  0x35   :  { %p1026_p9 = pnand %p1025_p8, %p1019_p5 }
  0x37   :  { %1029 = shalt.err (!%p1026_p9)
}
  0x38   :  { %101 = dma.hbm_to_vmem [thread:$0]  %s1573_s8, 16, %s99_s17, [#allocation12]  }
  0x39   :  { %s1030_s22 = scalar_lea.hbm %s1575_s10, 16 }
  0x3a   :  { %p1031_p10 = scmp.ne.s32.totalorder %s1575_s10, %s1030_s22  ;;  %p1034_p11 = scmp.lt.u32.totalorder %s1030_s22, %s1575_s10 }
  0x3c   :  { %p1036_p12 = pnand %p1034_p11, %p1031_p10 }
  0x3e   :  { %1039 = shalt.err (!%p1036_p12)
}
  0x3f   :  { %s1040_s27 = scalar_lea.vmem %s119_s20, 16  ;;  %s1044_s28 = scalar_lea.vmem %s119_s20, 32 }
  0x40   :  { %p1041_p13 = scmp.ne.s32.totalorder %s119_s20, %s1040_s27  ;;  %p1045_p0 = scmp.lt.s32.totalorder %s119_s20, %s119_s20 }
  0x41   :  { %p1046_p1 = scmp.lt.s32.totalorder %s1044_s28, %s1040_s27 }
  0x43   :  { %p1047_p2 = por %p1046_p1, %p1045_p0 }
  0x45   :  { %p1048_p3 = pnand %p1047_p2, %p1041_p13 }
  0x47   :  { %1051 = shalt.err (!%p1048_p3)
}
  0x48   :  { %121 = dma.hbm_to_vmem [thread:$0]  %s1575_s10, 16, %s119_s20, [#allocation15]  }
  0x49   :  { %s1226_s6 = smov [#allocation2]   ;;  %s1227_s4 = smov [#allocation7]  }
  0x4a   :  { %s39_s21 = sshll.u32 %s1226_s6, 4  ;;  %s63_s19 = sshll.u32 %s1227_s4, 4  ;;  %s40_s21 = int_to_ptr.vmem [resolvable:$true] %s39_s21  ;;  %s1378_s19 = int_to_ptr.vmem [resolvable:$true] %s63_s19 }
  0x4b   :  { %s1052_s22 = scalar_lea.hbm %s1568_s3, 256 }
  0x4c   :  { %p1053_p4 = scmp.ne.s32.totalorder %s1568_s3, %s1052_s22  ;;  %p1056_p5 = scmp.lt.u32.totalorder %s1052_s22, %s1568_s3 }
  0x4e   :  { %p1058_p6 = pnand %p1056_p5, %p1053_p4 }
  0x50   :  { %1061 = shalt.err (!%p1058_p6)
}
  0x51   :  { %s1062_s10 = scalar_lea.vmem %s40_s21, 256  ;;  %p1067_p8 = scmp.lt.s32.totalorder %s40_s21, %s40_s21 }
  0x52   :  { %p1063_p7 = scmp.ne.s32.totalorder %s40_s21, %s1062_s10  ;;  %p1068_p9 = scmp.lt.s32.totalorder %s1062_s10, %s1062_s10 }
  0x54   :  { %p1069_p10 = por %p1068_p9, %p1067_p8 }
  0x56   :  { %p1070_p11 = pnand %p1069_p10, %p1063_p7 }
  0x58   :  { %1073 = shalt.err (!%p1070_p11)
}
  0x59   :  { %45 = dma.hbm_to_vmem [thread:$0]  %s1568_s3, 256, %s40_s21, [#allocation3], %s1222_s30, %s1222_s30, %s1223_s16  }
  0x5a   :  { %s1074_s17 = scalar_lea.hbm %s1570_s5, 256 }
  0x5b   :  { %p1075_p12 = scmp.ne.s32.totalorder %s1570_s5, %s1074_s17  ;;  %p1078_p13 = scmp.lt.u32.totalorder %s1074_s17, %s1570_s5 }
  0x5d   :  { %p1080_p0 = pnand %p1078_p13, %p1075_p12 }
  0x5f   :  { %1083 = shalt.err (!%p1080_p0)
}
  0x60   :  { %s1084_s22 = scalar_lea.vmem %s1378_s19, 256  ;;  %p1089_p2 = scmp.lt.s32.totalorder %s1378_s19, %s1378_s19 }
  0x61   :  { %p1085_p1 = scmp.ne.s32.totalorder %s1378_s19, %s1084_s22  ;;  %p1090_p3 = scmp.lt.s32.totalorder %s1084_s22, %s1084_s22 }
  0x63   :  { %p1091_p4 = por %p1090_p3, %p1089_p2 }
  0x65   :  { %p1092_p5 = pnand %p1091_p4, %p1085_p1 }
  0x67   :  { %1095 = shalt.err (!%p1092_p5)
}
  0x68   :  { %69 = dma.hbm_to_vmem [thread:$0]  %s1570_s5, 256, %s1378_s19, [#allocation6], %s1222_s30, %s1222_s30, %s1223_s16  }
  0x69   :  { %s1228_s23 = smov [#allocation10]   ;;  %s1229_s25 = smov [#allocation13]  }
  0x6a   :  { %s88_s24 = sshll.u32 %s1228_s23, 4  ;;  %s108_s26 = sshll.u32 %s1229_s25, 4  ;;  %s89_s24 = int_to_ptr.vmem [resolvable:$true] %s88_s24  ;;  %s109_s26 = int_to_ptr.vmem [resolvable:$true] %s108_s26 }
  0x6b   :  { %s1096_s27 = scalar_lea.hbm %s1572_s7, 16 }
  0x6c   :  { %p1097_p6 = scmp.ne.s32.totalorder %s1572_s7, %s1096_s27  ;;  %p1100_p7 = scmp.lt.u32.totalorder %s1096_s27, %s1572_s7 }
  0x6e   :  { %p1102_p8 = pnand %p1100_p7, %p1097_p6 }
  0x70   :  { %1105 = shalt.err (!%p1102_p8)
}
  0x71   :  { %s1106_s5 = scalar_lea.vmem %s89_s24, 16  ;;  %s1110_s30 = scalar_lea.vmem %s89_s24, 32 }
  0x72   :  { %p1107_p9 = scmp.ne.s32.totalorder %s89_s24, %s1106_s5  ;;  %p1111_p10 = scmp.lt.s32.totalorder %s89_s24, %s89_s24 }
  0x73   :  { %p1112_p11 = scmp.lt.s32.totalorder %s1110_s30, %s1106_s5 }
  0x75   :  { %p1113_p12 = por %p1112_p11, %p1111_p10 }
  0x77   :  { %p1114_p13 = pnand %p1113_p12, %p1107_p9 }
  0x79   :  { %1117 = shalt.err (!%p1114_p13)
}
  0x7a   :  { %91 = dma.hbm_to_vmem [thread:$0]  %s1572_s7, 16, %s89_s24, [#allocation9]  }
  0x7b   :  { %s1118_s18 = scalar_lea.hbm %s1574_s9, 16 }
  0x7c   :  { %p1119_p0 = scmp.ne.s32.totalorder %s1574_s9, %s1118_s18  ;;  %p1122_p1 = scmp.lt.u32.totalorder %s1118_s18, %s1574_s9 }
  0x7e   :  { %p1124_p2 = pnand %p1122_p1, %p1119_p0 }
  0x80   :  { %1127 = shalt.err (!%p1124_p2)
}
  0x81   :  { %s1128_s25 = scalar_lea.vmem %s109_s26, 16  ;;  %s1132_s10 = scalar_lea.vmem %s109_s26, 32 }
  0x82   :  { %p1129_p3 = scmp.ne.s32.totalorder %s109_s26, %s1128_s25  ;;  %p1133_p4 = scmp.lt.s32.totalorder %s109_s26, %s109_s26 }
  0x83   :  { %p1134_p5 = scmp.lt.s32.totalorder %s1132_s10, %s1128_s25 }
  0x85   :  { %p1135_p6 = por %p1134_p5, %p1133_p4 }
  0x87   :  { %p1136_p7 = pnand %p1135_p6, %p1129_p3 }
  0x89   :  { %1139 = shalt.err (!%p1136_p7)
}
  0x8a   :  { %111 = dma.hbm_to_vmem [thread:$0]  %s1574_s9, 16, %s109_s26, [#allocation12]  }
  0x8b   :  { %s1230_s20 = smov [#allocation16]   ;;  %s1140_s17 = scalar_lea.hbm %s1577_s12, 16 }
  0x8c   :  { %s130_s27 = sshll.u32 %s1230_s20, 4  ;;  %p1141_p8 = scmp.ne.s32.totalorder %s1577_s12, %s1140_s17  ;;  %s131_s27 = int_to_ptr.vmem [resolvable:$true] %s130_s27 }
  0x8d   :  { %p1144_p9 = scmp.lt.u32.totalorder %s1140_s17, %s1577_s12 }
  0x8f   :  { %p1146_p10 = pnand %p1144_p9, %p1141_p8 }
  0x91   :  { %1149 = shalt.err (!%p1146_p10)
}
  0x92   :  { %s1150_s19 = scalar_lea.vmem %s131_s27, 16  ;;  %s1154_s9 = scalar_lea.vmem %s131_s27, 32 }
  0x93   :  { %p1151_p11 = scmp.ne.s32.totalorder %s131_s27, %s1150_s19  ;;  %p1155_p12 = scmp.lt.s32.totalorder %s131_s27, %s131_s27 }
  0x94   :  { %p1156_p13 = scmp.lt.s32.totalorder %s1154_s9, %s1150_s19 }
  0x96   :  { %p1157_p0 = por %p1156_p13, %p1155_p12 }
  0x98   :  { %p1158_p1 = pnand %p1157_p0, %p1151_p11 }
  0x9a   :  { %1161 = shalt.err (!%p1158_p1)
}
  0x9b   :  { %133 = dma.hbm_to_vmem [thread:$0]  %s1577_s12, 16, %s131_s27, [#allocation15]  }
  0x9c   :  { %1206 = dma.done.wait [#allocation3], 256  }
  0x9d   :  { %1207 = vsyncadd [#allocation3], 4294967040 }
  0x9e   :  { %1208 = dma.done.wait [#allocation6], 512  }
  0x9f   :  { %1209 = vsyncadd [#allocation6], 4294966784 }
  0xa0   :  { %1210 = dma.done.wait [#allocation9], 272  }
  0xa1   :  { %1211 = vsyncadd [#allocation9], 4294967024 }
  0xa2   :  { %1212 = dma.done.wait [#allocation12], 32  }
  0xa3   :  { %1213 = vsyncadd [#allocation12], 4294967264 }
  0xa4   :  { %1214 = dma.done.wait [#allocation15], 32  }
  0xa5   :  { %1215 = vsyncadd [#allocation15], 4294967264  ;;  %v1231_v0 = vmov 0.0   ;;  %vm1232_vm0 = vmmov 0   ;;  %v942_v1 = vld [vmem:[#allocation5] sm:$0xff]   ;;  %v943_v2 = vld [vmem:[#allocation2] sm:$0xff]   ;;  %v378_v46 = vlaneseq }
  0xa6   :  { %869 = vmatprep.subr.bf16.mxu1 %v1231_v0  ;;  %861 = vmatprep.subr.bf16.mxu0 %v1231_v0  ;;  %v944_v3 = vld [vmem:[#allocation5 + $0x8] sm:$0xff]   ;;  %v162_v4 = vld [vmem:[%s1565_s0] sm:$0xff]  ;;  %v163_v5 = vld [vmem:[%s1565_s0 + $0x8] sm:$0xff]  ;;  %vm191_vm1 = vcmask 261120   ;;  %vm508_vm2 = vcmask 1043456   ;;  %vm480_vm3 = vcmask 64512  }
  0xa7   :  { %873 = vmatprep.mubr.msk.bf16.mxu1 %vm1232_vm0, %v1231_v0  ;;  %865 = vmatprep.mubr.msk.bf16.mxu0 %vm1232_vm0, %v1231_v0  ;;  %v164_v6 = vld [vmem:[%s1567_s2] sm:$0xff]  ;;  %v945_v9 = vld [vmem:[#allocation2 + $0x8] sm:$0xff]   ;;  %v379_v47 = vshrl.u32 %v378_v46, 7  ;;  %vm715_vm4 = vcmask 1041409   ;;  %s1233_s8 = smov [#allocation17]  }
  0xa8   :  { %870 = vmatpush3.bf16.msra.mxu1 %v942_v1  ;;  %862 = vmatpush3.bf16.msra.mxu0 %v943_v2  ;;  %v1468_v7 = vadd.f32 %v164_v6, %v162_v4  ;;  %v1470_v8 = vadd.f32 %v164_v6, %v163_v5  ;;  %v946_v11 = vld [vmem:[#allocation7] sm:$0xff]   ;;  %v947_v12 = vld [vmem:[#allocation7 + $0x8] sm:$0xff]   ;;  %s782_s17 = sshll.u32 %s1233_s8, 4  ;;  %s783_s17 = int_to_ptr.vmem [resolvable:$true] %s782_s17 }
  0xa9   :  { %871 = vmatprep.subr.bf16.mxu1 %v1231_v0  ;;  %863 = vmatprep.subr.bf16.mxu0 %v1231_v0  ;;  %v818_v13 = vld [vmem:[#allocation11] ss:$0 sm:$0xff]  ;;  %v814_v14 = vld [vmem:[#allocation10] ss:$0 sm:$0xff]  ;;  %v822_v32 = vld [vmem:[#allocation13] ss:$0 sm:$0xff]  ;;  %p1167_p3 = scmp.lt.s32.totalorder %s783_s17, %s783_s17 }
  0xaa   :  { %v167_v10 = vpack.c.bf16 %v1470_v8, %v1468_v7  ;;  %v372_v48 = vld [vmem:[%s1566_s1] sm:$0x1]  ;;  %v373_v49 = vld [vmem:[%s1566_s1 + $0x1] sm:$0x1]  ;;  %v380_v51 = vsub.s32 0, %v379_v47  ;;  %s1162_s6 = scalar_lea.vmem %s783_s17, 256 }
  0xab   :  { %v374_v50 = vmul.f32 -1e+30, %v372_v48  ;;  %v375_v52 = vmul.f32 -1e+30, %v373_v49  ;;  %p1163_p2 = scmp.ne.s32.totalorder %s783_s17, %s1162_s6  ;;  %p1168_p4 = scmp.lt.s32.totalorder %s1162_s6, %s1162_s6 }
  0xac   :  { %872 = vmatpush3.bf16.msra.mxu1 %v944_v3  ;;  %864 = vmatpush3.bf16.msra.mxu0 %v945_v9 }
  0xad   :  { %885 = vmatprep.subr.bf16.mxu1 %v1231_v0  ;;  %877 = vmatprep.subr.bf16.mxu0 %v1231_v0  ;;  %v381_v53 = vrot.slane %v374_v50, %v380_v51  ;;  %v385_v54 = vrot.slane %v375_v52, %v380_v51  ;;  %p1169_p5 = por %p1168_p4, %p1167_p3 }
  0xaf   :  { %874 = vmatmul.mubr.msk.bf16.vlgmr.msra.gmra.mrb[0].mxu1 %vm191_vm1, %v167_v10  ;;  %866 = vmatmul.mubr.msk.bf16.vlgmr.msra.gmra.mrb[0].mxu0 %vm191_vm1, %v167_v10  ;;  %p1170_p6 = pnand %p1169_p5, %p1163_p2 }
  0xb0   :  { %887 = vmatprep.mubr.msk.bf16.mxu1 %vm1232_vm0, %v1231_v0  ;;  %878 = vmatpush3.bf16.msra.mxu0 %v946_v11 }
  0xb1   :  { %881 = vmatprep.mubr.msk.bf16.mxu0 %vm1232_vm0, %v1231_v0  ;;  %879 = vmatprep.subr.bf16.mxu0 %v1231_v0 }
  0xb4   :  { %880 = vmatpush3.bf16.msra.mxu0 %v947_v12 }
  0xb5   :  { %891 = vmatprep.subr.bf16.mxu0 %v1231_v0 }
  0xb7   :  { %882 = vmatmul.mubr.msk.bf16.vlgmr.msra.gmra.mrb[4].mxu0 %vm191_vm1, %v167_v10 }
  0xb8   :  { %893 = vmatprep.mubr.msk.bf16.mxu0 %vm1232_vm0, %v1231_v0 }
 0x182   :  { %v295_v15 = vpop.f32.mrb[0].mxu1  ;;  %v229_v18 = vpop.f32.mrb[0].mxu0 }
 0x183   :  { %v296_v16 = vadd.f32 %v818_v13, %v295_v15  ;;  %v875_v17 = vpop.f32.mrb[1].mxu1  ;;  %v230_v20 = vadd.f32 %v814_v14, %v229_v18  ;;  %v867_v21 = vpop.f32.mrb[1].mxu0 }
 0x184   :  { %v298_v19 = vpop.f32.mrb[2].mxu1  ;;  %v232_v25 = vpop.f32.mrb[2].mxu0 }
 0x185   :  { %v368_v22 = vpack.c.bf16 %v296_v16, %v296_v16  ;;  %v299_v23 = vadd.f32 %v818_v13, %v298_v19  ;;  %v876_v24 = vpop.f32.mrb[3].mxu1  ;;  %v868_v26 = vpop.f32.mrb[3].mxu0  ;;  %v236_v29 = vmul.f32 0.17677669, %v230_v20  ;;  %v233_v30 = vadd.f32 %v814_v14, %v232_v25  ;;  %v949_v25 = vld [vmem:[#allocation8 + $0x8] sm:$0xff]  }
 0x186   :  { %v948_v24 = vld [vmem:[#allocation8] sm:$0xff]  }
 0x187   :  { %v392_v27 = vsel %vm191_vm1, %v368_v22, 0  ;;  %v369_v28 = vpack.c.bf16 %v299_v23, %v299_v23  ;;  %v366_v33 = vpack.c.bf16 %v236_v29, %v236_v29  ;;  %v237_v34 = vmul.f32 0.17677669, %v233_v30 }
 0x188   :  { %886 = vmatpush3.bf16.xpose.msra.mxu1 %v392_v27 }
 0x189   :  { %v438_v31 = vsel %vm191_vm1, %v369_v28, 0  ;;  %897 = vmatprep.subr.bf16.mxu1 %v1231_v0  ;;  %v367_v42 = vpack.c.bf16 %v237_v34, %v237_v34 }
 0x18a   :  { %892 = vmatpush3.bf16.xpose.msra.mxu0 %v438_v31  ;;  %v359_v35 = vpop.f32.mrb[4].mxu0 }
 0x18b   :  { %903 = vmatprep.subr.bf16.mxu0 %v1231_v0  ;;  %v360_v36 = vadd.f32 %v822_v32, %v359_v35  ;;  %v883_v37 = vpop.f32.mrb[5].mxu0  ;;  %v830_v35 = vld [vmem:[#allocation14] ss:$0 sm:$0xff] }
 0x18c   :  { %v362_v38 = vpop.f32.mrb[6].mxu0 }
 0x18d   :  { %v370_v39 = vpack.c.bf16 %v360_v36, %v360_v36  ;;  %v363_v40 = vadd.f32 %v822_v32, %v362_v38  ;;  %v884_v41 = vpop.f32.mrb[7].mxu0 }
 0x18f   :  { %888 = vmatmul.mubr.msk.bf16.vlgmr.msra.gmra.mrb[4].mxu1 %vm191_vm1, %v366_v33  ;;  %v510_v43 = vsel %vm508_vm2, %v370_v39, 0  ;;  %v371_v44 = vpack.c.bf16 %v363_v40, %v363_v40 }
 0x190   :  { %899 = vmatprep.mubr.msk.bf16.mxu1 %vm1232_vm0, %v1231_v0  ;;  %898 = vmatpush3.bf16.msra.mxu1 %v510_v43 }
 0x191   :  { %894 = vmatmul.mubr.msk.bf16.vlgmr.msra.gmra.mrb[8].mxu0 %vm191_vm1, %v367_v42  ;;  %v556_v45 = vsel %vm508_vm2, %v371_v44, 0  ;;  %909 = vmatprep.subr.bf16.mxu1 %v1231_v0 }
 0x192   :  { %905 = vmatprep.mubr.msk.bf16.mxu0 %vm1232_vm0, %v1231_v0  ;;  %904 = vmatpush3.bf16.msra.mxu0 %v556_v45 }
 0x193   :  { %917 = vmatprep.subr.bf16.mxu0 %v1231_v0 }
 0x262   :  { %v428_v55 = vpop.f32.mrb[4].mxu1 }
 0x263   :  { %v429_v56 = vadd.f32 %v428_v55, %v381_v53  ;;  %v889_v57 = vpop.f32.mrb[5].mxu1  ;;  %v951_v55 = vld [vmem:[%s1576_s11 + $0x8] sm:$0xff]  }
 0x264   :  { %v431_v58 = vpop.f32.mrb[6].mxu1  ;;  %v474_v59 = vpop.f32.mrb[8].mxu0 }
 0x265   :  { %v475_v60 = vadd.f32 %v474_v59, %v385_v54  ;;  %v890_v61 = vpop.f32.mrb[7].mxu1  ;;  %v895_v62 = vpop.f32.mrb[9].mxu0  ;;  %v481_v63 = vsel %vm480_vm3, %v429_v56, -inf }
 0x266   :  { %482 = vmax.xlane.f32.xlu0 %v481_v63  ;;  %v477_v1 = vpop.f32.mrb[10].mxu0 }
 0x267   :  { %v896_v2 = vpop.f32.mrb[11].mxu0  ;;  %v484_v3 = vsel %vm480_vm3, %v475_v60, -inf }
 0x26a   :  { %485 = vmax.xlane.f32.xlu0 %v484_v3 }
 0x2f3   :  { %v483_v4 = vpop.xlane.xlu0 %482 }
 0x2f4   :  { %v487_v5 = vsub.f32 %v429_v56, %v483_v4 }
 0x2f6   :  { %v489_v6 = vmul.f32 1.442695, %v487_v5 }
 0x2f7   :  { %v486_v9 = vpop.xlane.xlu0 %485 }
 0x2f8   :  { %952 = vpow2.f32 %v489_v6  ;;  %v488_v10 = vsub.f32 %v475_v60, %v486_v9 }
 0x2fa   :  { %v491_v11 = vmul.f32 1.442695, %v488_v10 }
 0x2fc   :  { %954 = vpow2.f32 %v491_v11 }
 0x302   :  { %v953_v12 = vpop.eup %952 }
 0x303   :  { %v493_v13 = vsel %vm480_vm3, %v953_v12, 0.0 }
 0x304   :  { %494 = vadd.xlane.f32.xlu1 %v493_v13 }
 0x306   :  { %v955_v14 = vpop.eup %954 }
 0x307   :  { %v496_v15 = vsel %vm480_vm3, %v955_v14, 0.0 }
 0x308   :  { %497 = vadd.xlane.f32.xlu1 %v496_v15 }
 0x391   :  { %v495_v16 = vpop.xlane.xlu1 %494 }
 0x392   :  { %956 = vrcp.f32 %v495_v16 }
 0x395   :  { %v498_v17 = vpop.xlane.xlu1 %497 }
 0x396   :  { %958 = vrcp.f32 %v498_v17 }
 0x39c   :  { %v957_v18 = vpop.eup %956 }
 0x39d   :  { %v501_v19 = vmul.f32 %v957_v18, %v953_v12 }
 0x39f   :  { %695 = vst.msk [vmem:[#allocation17] sm:$0xff] %vm480_vm3, %v501_v19  ;;  %v503_v20 = vpack.c.bf16 %v501_v19, %v501_v19 }
 0x3a0   :  { %v959_v21 = vpop.eup %958 }
 0x3a1   :  { %v502_v22 = vmul.f32 %v959_v21, %v955_v14  ;;  %900 = vmatmul.mubr.msk.bf16.vlgmr.msra.gmra.mrb[8].mxu1 %vm480_vm3, %v503_v20 }
 0x3a2   :  { %913 = vmatprep.mubr.msk.bf16.mxu1 %vm1232_vm0, %v1231_v0  ;;  %910 = vmatpush3.bf16.msra.mxu1 %v948_v24 }
 0x3a3   :  { %696 = vst.msk [vmem:[#allocation17 + $0x8] sm:$0xff] %vm480_vm3, %v502_v22  ;;  %v504_v23 = vpack.c.bf16 %v502_v22, %v502_v22  ;;  %911 = vmatprep.subr.bf16.mxu1 %v1231_v0 }
 0x3a5   :  { %906 = vmatmul.mubr.msk.bf16.vlgmr.msra.gmra.mrb[12].mxu0 %vm480_vm3, %v504_v23 }
 0x3a6   :  { %921 = vmatprep.mubr.msk.bf16.mxu0 %vm1232_vm0, %v1231_v0  ;;  %912 = vmatpush3.bf16.msra.mxu1 %v949_v25 }
 0x474   :  { %v546_v26 = vpop.f32.mrb[8].mxu1 }
 0x475   :  { %v901_v27 = vpop.f32.mrb[9].mxu1 }
 0x476   :  { %v549_v28 = vpop.f32.mrb[10].mxu1 }
 0x477   :  { %v902_v29 = vpop.f32.mrb[11].mxu1 }
 0x478   :  { %v592_v30 = vpop.f32.mrb[12].mxu0 }
 0x479   :  { %v598_v31 = vpack.c.bf16 %v592_v30, %v546_v26  ;;  %v907_v32 = vpop.f32.mrb[13].mxu0 }
 0x47a   :  { %v595_v33 = vpop.f32.mrb[14].mxu0 }
 0x47b   :  { %v908_v34 = vpop.f32.mrb[15].mxu0  ;;  %914 = vmatmul.mubr.msk.bf16.vlgmr.msra.gmra.mrb[12].mxu1 %vm191_vm1, %v598_v31 }
 0x54e   :  { %v659_v36 = vpop.f32.mrb[12].mxu1 }
 0x54f   :  { %v660_v37 = vadd.f32 %v830_v35, %v659_v36  ;;  %v915_v38 = vpop.f32.mrb[13].mxu1 }
 0x550   :  { %v662_v39 = vpop.f32.mrb[14].mxu1 }
 0x551   :  { %v663_v40 = vadd.f32 %v830_v35, %v662_v39  ;;  %v916_v41 = vpop.f32.mrb[15].mxu1  ;;  %v666_v42 = vadd.f32 %v660_v37, %v1468_v7 }
 0x553   :  { %v668_v43 = vsel %vm191_vm1, %v666_v42, 0.0  ;;  %v667_v44 = vadd.f32 %v663_v40, %v1470_v8  ;;  %v950_v8 = vld [vmem:[%s1576_s11] sm:$0xff]  }
 0x554   :  { %669 = vadd.xlane.f32.xlu1 %v668_v43  ;;  %918 = vmatpush3.bf16.msra.mxu0 %v950_v8 }
 0x555   :  { %v671_v45 = vsel %vm191_vm1, %v667_v44, 0.0  ;;  %919 = vmatprep.subr.bf16.mxu0 %v1231_v0 }
 0x556   :  { %672 = vadd.xlane.f32.xlu0 %v671_v45 }
 0x558   :  { %920 = vmatpush3.bf16.msra.mxu0 %v951_v55 }
 0x5e1   :  { %v670_v46 = vpop.xlane.xlu1 %669 }
 0x5e2   :  { %v675_v47 = vmul.f32 0.03125, %v670_v46 }
 0x5e3   :  { %v673_v48 = vpop.xlane.xlu0 %672 }
 0x5e4   :  { %v677_v49 = vsub.f32 %v666_v42, %v675_v47  ;;  %v676_v50 = vmul.f32 0.03125, %v673_v48 }
 0x5e6   :  { %v678_v51 = vsub.f32 %v667_v44, %v676_v50  ;;  %v679_v52 = vmul.f32 %v677_v49, %v677_v49 }
 0x5e8   :  { %v681_v53 = vsel %vm191_vm1, %v679_v52, 0.0  ;;  %v680_v54 = vmul.f32 %v678_v51, %v678_v51 }
 0x5e9   :  { %682 = vadd.xlane.f32.xlu1 %v681_v53 }
 0x5ea   :  { %v684_v7 = vsel %vm191_vm1, %v680_v54, 0.0 }
 0x5eb   :  { %685 = vadd.xlane.f32.xlu0 %v684_v7 }
 0x676   :  { %v683_v56 = vpop.xlane.xlu1 %682 }
 0x677   :  { %v687_v57 = vmul.f32 0.032258064, %v683_v56 }
 0x678   :  { %v686_v58 = vpop.xlane.xlu0 %685 }
 0x679   :  { %960 = vrsqrt.f32 %v687_v57  ;;  %v688_v59 = vmul.f32 0.032258064, %v686_v58 }
 0x67b   :  { %962 = vrsqrt.f32 %v688_v59 }
 0x683   :  { %v961_v60 = vpop.eup %960 }
 0x684   :  { %v691_v61 = vmul.f32 %v961_v60, %v677_v49 }
 0x685   :  { %v963_v62 = vpop.eup %962 }
 0x686   :  { %693 = vst.msk [vmem:[%s1578_s13] sm:$0xff] %vm191_vm1, %v691_v61  ;;  %v692_v0 = vmul.f32 %v963_v62, %v678_v51  ;;  %v697_v63 = vpack.c.bf16 %v691_v61, %v691_v61 }
 0x688   :  { %694 = vst.msk [vmem:[%s1578_s13 + $0x8] sm:$0xff] %vm191_vm1, %v692_v0  ;;  %v698_v1 = vpack.c.bf16 %v692_v0, %v692_v0  ;;  %v712_v3 = vunpack.c.l.b16 %v697_v63 }
 0x68a   :  { %v713_v2 = vunpack.c.l.b16 %v698_v1 }
 0x68c   :  { %v714_v4 = vrot.slane %v713_v2, 7 }
 0x68e   :  { %v716_v5 = vsel %vm715_vm4, %v714_v4, %v712_v3 }
 0x68f   :  { %v717_v6 = vpack.c.b16 %v716_v5, %v716_v5 }
 0x691   :  { %922 = vmatmul.mubr.msk.bf16.vlgmr.msra.gmra.mrb[16].mxu0 %vm191_vm1, %v717_v6 }
 0x692   :  { %1173 = shalt.err (!%p1170_p6)
}
 0x693   :  { %s1174_s30 = scalar_lea.hbm %s1579_s14, 256 }
 0x694   :  { %p1175_p7 = scmp.ne.s32.totalorder %s1579_s14, %s1174_s30  ;;  %p1178_p8 = scmp.lt.u32.totalorder %s1174_s30, %s1579_s14 }
 0x696   :  { %p1180_p9 = pnand %p1178_p8, %p1175_p7 }
 0x698   :  { %1183 = shalt.err (!%p1180_p9)
}
 0x699   :  { %s1234_s4 = smov 128   ;;  %s1235_s12 = smov 8   ;;  %v834_v9 = vld [vmem:[#allocation16] ss:$0 sm:$0xff]  ;;  %vm773_vm5 = vcmask 17408  }
 0x69a   :  { %788 = dma.vmem_to_hbm [thread:$0]  %s783_s17, 256, %s1579_s14, [#allocation4], %s1234_s4, %s1234_s4, %s1235_s12  }
 0x69b   :  { %s1236_s22 = smov [#allocation18]  }
 0x69c   :  { %s795_s3 = sshll.u32 %s1236_s22, 4  ;;  %s796_s3 = int_to_ptr.vmem [resolvable:$true] %s795_s3 }
 0x69d   :  { %s1184_s21 = scalar_lea.vmem %s796_s3, 32  ;;  %p1189_p11 = scmp.lt.s32.totalorder %s796_s3, %s796_s3 }
 0x69e   :  { %p1185_p10 = scmp.ne.s32.totalorder %s796_s3, %s1184_s21  ;;  %p1190_p12 = scmp.lt.s32.totalorder %s1184_s21, %s1184_s21 }
 0x6a0   :  { %p1191_p13 = por %p1190_p12, %p1189_p11 }
 0x6a2   :  { %p1192_p0 = pnand %p1191_p13, %p1185_p10 }
 0x764   :  { %v767_v10 = vpop.f32.mrb[16].mxu0 }
 0x765   :  { %v768_v11 = vadd.f32 %v834_v9, %v767_v10  ;;  %v923_v12 = vpop.f32.mrb[17].mxu0 }
 0x766   :  { %v770_v13 = vpop.f32.mrb[18].mxu0 }
 0x767   :  { %v924_v14 = vpop.f32.mrb[19].mxu0  ;;  %774 = vst.msk [vmem:[#allocation18] sm:$0x3] %vm773_vm5, %v768_v11 }
 0x768   :  { %1195 = shalt.err (!%p1192_p0)
}
 0x769   :  { %s1196_s2 = scalar_lea.hbm %s1580_s15, 32 }
 0x76a   :  { %p1197_p1 = scmp.ne.s32.totalorder %s1580_s15, %s1196_s2  ;;  %p1200_p2 = scmp.lt.u32.totalorder %s1196_s2, %s1580_s15 }
 0x76c   :  { %p1202_p3 = pnand %p1200_p2, %p1197_p1 }
 0x76e   :  { %1205 = shalt.err (!%p1202_p3)
}
 0x76f   :  { %798 = dma.vmem_to_hbm [thread:$0]  %s796_s3, 32, %s1580_s15, [#allocation19]  }
 0x770   :  { %1216 = dma.done.wait [#allocation4], 256  }
 0x771   :  { %1217 = vsyncadd [#allocation4], 4294967040 }
 0x772   :  { %1218 = dma.done.wait [#allocation19], 32  }
 0x773   :  { %1219 = vsyncadd [#allocation19], 4294967264 }
 0x774   :  { %807 = vsyncpa [#allocation3], 1 }
 0x775   :  { %808 = vsyncpa [#allocation6], 1 }
 0x776   :  { %809 = vsyncpa [#allocation9], 1 }
 0x777   :  { %810 = vsyncpa [#allocation12], 1 }
 0x778   :  { %811 = vsyncpa [#allocation15], 1 }
 0x779   :  { %812 = vsyncpa [#allocation4], 1 }
 0x77a   :  { %813 = vsyncpa [#allocation19], 1 }

</bundles_post_ra>
